<compile_context>
chip_gen: v6e
topology: v6e:2x2x1
jax: 0.10.0
libtpu: 0.0.40
codegen_flags: <defaults>
</compile_context>

<pallas_src>
import functools

import jax
import jax.numpy as jnp
from jax.experimental import pallas as pl
from jax.experimental.pallas import tpu as pltpu


def _round_up(a, b):
    return (a + b - 1) // b * b


def _cdiv(a, b):
    return (a + b - 1) // b


def _choose_tiles(nc, hw, itemsize, *, target_block_bytes, vmem_budget_bytes):
    """Pick (row_tile, spatial_tile) for the (NC, HW) view of the input."""
    sub = {4: 8, 2: 16, 1: 32}.get(itemsize, 8)      # sublane multiple per dtype

    # --- spatial (lane / reduction) tile ---
    if hw <= 128 or sub * hw * itemsize <= target_block_bytes:
        thw = hw                                      # full dim: no reduction masking
    else:
        max_thw = max(128, (target_block_bytes // (sub * itemsize)) // 128 * 128)
        n_k = _cdiv(hw, max_thw)
        thw = _round_up(_cdiv(hw, n_k), 128)          # balanced tiles (<= max_thw)

    # --- row (sublane) tile ---
    if nc <= sub:
        tm = nc                                       # full dim
    else:
        # double-buffered input block + lane-padded (tm,1) f32 accumulators
        per_row_bytes = 2 * thw * itemsize + 2 * 512
        tm_budget = max(sub, vmem_budget_bytes // per_row_bytes)
        tm_target = max(sub, target_block_bytes // max(1, thw * itemsize))
        tm = max(sub, min(tm_budget, tm_target) // sub * sub)
        tm = min(tm, max(sub, nc // sub * sub))       # don't exceed the array
        # v7x megacore: prefer >= 2 "parallel" row tiles when the rows allow it.
        if _cdiv(nc, tm) < 2:
            tm = min(tm, max(sub, _round_up(_cdiv(nc, 2), sub)))
    return tm, thw


def _concat_pool_kernel(x_ref, out_ref, max_acc, sum_acc, *, inv_hw, rem_cols):
    k = pl.program_id(1)                  # spatial (reduction) grid axis
    last_k = pl.num_programs(1) - 1

    @pl.when(k == 0)
    def _init():
        max_acc[...] = jnp.full(max_acc.shape, -jnp.inf, jnp.float32)
        sum_acc[...] = jnp.zeros(sum_acc.shape, jnp.float32)

    x = x_ref[...].astype(jnp.float32)    # (tm, thw); f32 accumulation

    def _accumulate(x_for_max, x_for_sum):
        max_acc[...] = jnp.maximum(max_acc[...],
                                   jnp.max(x_for_max, axis=-1, keepdims=True))
        sum_acc[...] = sum_acc[...] + jnp.sum(x_for_sum, axis=-1, keepdims=True)

    if rem_cols is None:
        # Spatial axis divides evenly: pure 2-pass max+add on every block.
        _accumulate(x, x)
    else:
        # Only the last spatial block holds out-of-range (undefined) lanes; every
        # other block stays on the unmasked path.
        @pl.when(k != last_k)
        def _full():
            _accumulate(x, x)

        @pl.when(k == last_k)
        def _masked():
            cols = jax.lax.broadcasted_iota(jnp.int32, x.shape, 1)
            valid = cols < rem_cols       # static bound (python int)
            _accumulate(jnp.where(valid, x, -jnp.inf), jnp.where(valid, x, 0.0))

    @pl.when(k == last_k)
    def _finalize():
        out_ref[:, 0:1] = max_acc[...].astype(out_ref.dtype)
        out_ref[:, 1:2] = (sum_acc[...] * inv_hw).astype(out_ref.dtype)


def adaptive_concat_pool2d(x, *, target_block_bytes=2 * 1024 * 1024,
                           vmem_budget_bytes=20 * 1024 * 1024):
    """x: (N, C, H, W) -> (N, 2*C, 1, 1) = concat([global max, global mean], ch)."""
    n, c, h, w = x.shape
    nc, hw = n * c, h * w
    itemsize = jnp.dtype(x.dtype).itemsize

    tm, thw = _choose_tiles(nc, hw, itemsize,
                            target_block_bytes=target_block_bytes,
                            vmem_budget_bytes=vmem_budget_bytes)
    n_rows = _cdiv(nc, tm)
    n_k = _cdiv(hw, thw)
    rem = hw - (n_k - 1) * thw
    rem_cols = None if rem == thw else rem   # static; only last spatial block masked

    x2d = x.reshape(nc, hw)                  # view-only; no padding / extra HBM copy

    kernel = functools.partial(_concat_pool_kernel, inv_hw=1.0 / hw,
                               rem_cols=rem_cols)

    out = pl.pallas_call(
        kernel,
        out_shape=jax.ShapeDtypeStruct((nc, 2), x.dtype),
        grid_spec=pltpu.PrefetchScalarGridSpec(
            num_scalar_prefetch=0,
            grid=(n_rows, n_k),
            in_specs=[pl.BlockSpec((tm, thw), lambda i, k: (i, k))],
            out_specs=pl.BlockSpec((tm, 2), lambda i, k: (i, 0)),
            scratch_shapes=[
                pltpu.VMEM((tm, 1), jnp.float32),   # running max
                pltpu.VMEM((tm, 1), jnp.float32),   # running sum (f32 accumulation)
            ],
        ),
        compiler_params=pltpu.CompilerParams(
            dimension_semantics=("parallel", "arbitrary"),
            vmem_limit_bytes=32 * 1024 * 1024,       # safe on v5e / v6e / v7x
        ),
        cost_estimate=pl.CostEstimate(
            flops=2 * nc * hw,                       # one max-cmp + one add per elem
            transcendentals=0,
            bytes_accessed=nc * hw * itemsize + 2 * nc * itemsize,
        ),
    )(x2d)

    # out[:, 0] = per-(n,c) max, out[:, 1] = per-(n,c) mean.  Lay the channels out
    # as [max_0..max_{C-1}, avg_0..avg_{C-1}] to match torch.cat(..., dim=1).
    pooled = out.reshape(n, c, 2)
    return jnp.transpose(pooled, (0, 2, 1)).reshape(n, 2 * c, 1, 1)


if __name__ == "__main__":
    def _reference(x):
        ref_max = jnp.max(x, axis=(2, 3), keepdims=True)
        ref_avg = jnp.mean(x, axis=(2, 3), keepdims=True)
        return jnp.concatenate([ref_max, ref_avg], axis=1)

    # Canonical small shape (even blocks, no masking).
    x = jax.random.normal(jax.random.PRNGKey(0), (2, 4, 16, 16), dtype=jnp.float32)
    out = adaptive_concat_pool2d(x)
    jax.block_until_ready(out)
    assert out.shape == (2, 8, 1, 1), out.shape
    assert jnp.allclose(out, _reference(x), atol=1e-5, rtol=1e-5), "mismatch (even)"

    # Shape exercising partial row blocks and the masked last spatial block
    # (tiny target block forces HW=225 to tile as 128 + 97).
    x2 = jax.random.normal(jax.random.PRNGKey(0), (2, 5, 15, 15), dtype=jnp.float32)
    out2 = adaptive_concat_pool2d(x2, target_block_bytes=4096)
    jax.block_until_ready(out2)
    assert out2.shape == (2, 10, 1, 1), out2.shape
    assert jnp.allclose(out2, _reference(x2), atol=1e-5, rtol=1e-5), "mismatch (ragged)"

    print("KERNEL_OK")
</pallas_src>

<mosaic_0001>
module attributes {stable_mosaic.version = 11 : i64} {
  func.func @_concat_pool_kernel(%arg0: i32, %arg1: i32, %arg2: memref<8x256xf32, #tpu.memory_space<vmem>>, %arg3: memref<8x2xf32, #tpu.memory_space<vmem>>, %arg4: memref<8x1xf32, #tpu.memory_space<vmem>>, %arg5: memref<8x1xf32, #tpu.memory_space<vmem>>) attributes {dimension_semantics = [#tpu.dimension_semantics<parallel>, #tpu.dimension_semantics<arbitrary>], iteration_bounds = array<i64: 1, 1>, scalar_prefetch = 0 : i64, scratch_operands = 2 : i64, tpu.core_type = #tpu.core_type<tc>, window_params = [{transform_indices = @transform_0, window_bounds = array<i64: 8, 256>}, {transform_indices = @transform_1, window_bounds = array<i64: 8, 2>}]} {
    %c0_i32 = arith.constant 0 : i32
    %0 = arith.cmpi eq, %arg1, %c0_i32 : i32
    %1 = arith.extui %0 : i1 to i32
    %c0_i32_0 = arith.constant 0 : i32
    %2 = arith.cmpi ne, %1, %c0_i32_0 : i32
    scf.if %2 {
      %cst_13 = arith.constant 0xFF800000 : f32
      %17 = vector.broadcast %cst_13 : f32 to vector<8x1xf32>
      %c0_14 = arith.constant 0 : index
      %c0_15 = arith.constant 0 : index
      %18 = vector.load %arg4[%c0_14, %c0_15] : memref<8x1xf32, #tpu.memory_space<vmem>>, vector<8x1xf32>
      tpu.vector_store %arg4[%c0_14, %c0_15], %17 {strides = array<i32>} : memref<8x1xf32, #tpu.memory_space<vmem>>, vector<8x1xf32>,
      %cst_16 = arith.constant 0.000000e+00 : f32
      %19 = vector.broadcast %cst_16 : f32 to vector<8x1xf32>
      %c0_17 = arith.constant 0 : index
      %c0_18 = arith.constant 0 : index
      %20 = vector.load %arg5[%c0_17, %c0_18] : memref<8x1xf32, #tpu.memory_space<vmem>>, vector<8x1xf32>
      tpu.vector_store %arg5[%c0_17, %c0_18], %19 {strides = array<i32>} : memref<8x1xf32, #tpu.memory_space<vmem>>, vector<8x1xf32>,
    } else {
    }
    %c0 = arith.constant 0 : index
    %c0_1 = arith.constant 0 : index
    %3 = vector.load %arg2[%c0, %c0_1] : memref<8x256xf32, #tpu.memory_space<vmem>>, vector<8x256xf32>
    %c0_2 = arith.constant 0 : index
    %c0_3 = arith.constant 0 : index
    %4 = vector.load %arg4[%c0_2, %c0_3] : memref<8x1xf32, #tpu.memory_space<vmem>>, vector<8x1xf32>
    %cst = arith.constant dense<0xFF800000> : vector<8xf32>
    %5 = vector.multi_reduction <maximumf>, %3, %cst [1] : vector<8x256xf32> to vector<8xf32>
    %6 = vector.shape_cast %5 : vector<8xf32> to vector<8x1xf32>
    %7 = arith.maximumf %4, %6 : vector<8x1xf32>
    %c0_4 = arith.constant 0 : index
    %c0_5 = arith.constant 0 : index
    %8 = vector.load %arg4[%c0_4, %c0_5] : memref<8x1xf32, #tpu.memory_space<vmem>>, vector<8x1xf32>
    tpu.vector_store %arg4[%c0_4, %c0_5], %7 {strides = array<i32>} : memref<8x1xf32, #tpu.memory_space<vmem>>, vector<8x1xf32>,
    %c0_6 = arith.constant 0 : index
    %c0_7 = arith.constant 0 : index
    %9 = vector.load %arg5[%c0_6, %c0_7] : memref<8x1xf32, #tpu.memory_space<vmem>>, vector<8x1xf32>
    %cst_8 = arith.constant dense<0.000000e+00> : vector<8xf32>
    %10 = vector.multi_reduction <add>, %3, %cst_8 [1] : vector<8x256xf32> to vector<8xf32>
    %11 = vector.shape_cast %10 : vector<8xf32> to vector<8x1xf32>
    %12 = arith.addf %9, %11 : vector<8x1xf32>
    %c0_9 = arith.constant 0 : index
    %c0_10 = arith.constant 0 : index
    %13 = vector.load %arg5[%c0_9, %c0_10] : memref<8x1xf32, #tpu.memory_space<vmem>>, vector<8x1xf32>
    tpu.vector_store %arg5[%c0_9, %c0_10], %12 {strides = array<i32>} : memref<8x1xf32, #tpu.memory_space<vmem>>, vector<8x1xf32>,
    %c0_i32_11 = arith.constant 0 : i32
    %14 = arith.cmpi eq, %arg1, %c0_i32_11 : i32
    %15 = arith.extui %14 : i1 to i32
    %c0_i32_12 = arith.constant 0 : i32
    %16 = arith.cmpi ne, %15, %c0_i32_12 : i32
    scf.if %16 {
      %c0_13 = arith.constant 0 : index
      %c0_14 = arith.constant 0 : index
      %17 = vector.load %arg4[%c0_13, %c0_14] : memref<8x1xf32, #tpu.memory_space<vmem>>, vector<8x1xf32>
      %c0_15 = arith.constant 0 : index
      %c0_16 = arith.constant 0 : index
      %18 = vector.load %arg3[%c0_15, %c0_16] : memref<8x2xf32, #tpu.memory_space<vmem>>, vector<8x1xf32>
      tpu.vector_store %arg3[%c0_15, %c0_16], %17 {strides = array<i32>} : memref<8x2xf32, #tpu.memory_space<vmem>>, vector<8x1xf32>,
      %c0_17 = arith.constant 0 : index
      %c0_18 = arith.constant 0 : index
      %19 = vector.load %arg5[%c0_17, %c0_18] : memref<8x1xf32, #tpu.memory_space<vmem>>, vector<8x1xf32>
      %cst_19 = arith.constant 3.906250e-03 : f32
      %20 = vector.broadcast %cst_19 : f32 to vector<8x1xf32>
      %21 = arith.mulf %19, %20 : vector<8x1xf32>
      %c0_20 = arith.constant 0 : index
      %c1 = arith.constant 1 : index
      %22 = vector.load %arg3[%c0_20, %c1] : memref<8x2xf32, #tpu.memory_space<vmem>>, vector<8x1xf32>
      tpu.vector_store %arg3[%c0_20, %c1], %21 {strides = array<i32>} : memref<8x2xf32, #tpu.memory_space<vmem>>, vector<8x1xf32>,
    } else {
    }
    return
  }
  func.func @transform_0(%arg0: i32, %arg1: i32) -> (i32, i32) {
    %c0_i32 = arith.constant 0 : i32
    return %arg0, %arg1 : i32, i32
  }
  func.func @transform_1(%arg0: i32, %arg1: i32) -> (i32, i32) {
    %c0_i32 = arith.constant 0 : i32
    %c0_i32_0 = arith.constant 0 : i32
    return %arg0, %c0_i32 : i32, i32
  }
}

</mosaic_0001>

<bundles_post_ra>
// kernel: tpu_custom_call.1
= control target key start
LH: loop header
LB: loop body
LE: loop exit
PB: predicated region body
PF: predicated region fallthrough
CT: control target
= control target key end

     0   :  { %6 = vsyncpa [#allocation5], 0  ;;  %s86_s6 = smov [#allocation4]   ;;  %s114_s0 = inlined_call_operand.hbm [shape: f32[8,256], index: 0, kind: input, shape index: {}]   ;;  %s115_s1 = inlined_call_operand.vmem [shape: f32[8,2], index: 1, kind: output, shape index: {}]  }
   0x1   :  { %s13_s7 = sshll.u32 %s86_s6, 4  ;;  %s14_s7 = int_to_ptr.vmem [resolvable:$true] %s13_s7 }
   0x2   :  { %s72_s8 = scalar_lea.vmem %s14_s7, 256  ;;  %p77_p1 = scmp.lt.s32.totalorder %s14_s7, %s14_s7 }
   0x3   :  { %p73_p0 = scmp.ne.s32.totalorder %s14_s7, %s72_s8  ;;  %p78_p2 = scmp.lt.s32.totalorder %s72_s8, %s72_s8 }
   0x5   :  { %p79_p3 = por %p78_p2, %p77_p1 }
   0x7   :  { %p80_p4 = pnand %p79_p3, %p73_p0 }
   0x9   :  { %83 = shalt.err (!%p80_p4)
}
   0xa   :  { %16 = dma.hbm_to_vmem [thread:$0]  %s114_s0, 256, %s14_s7, [#allocation5]  }
   0xb   :  { %84 = dma.done.wait [#allocation5], 256  }
   0xc   :  { %85 = vsyncadd [#allocation5], 4294967040  ;;  %vm24_vm0 = vcmask 7168   ;;  %v87_v0 = vmov 0.0   ;;  %v27_v1 = vld [vmem:[#allocation4] sm:$0xff]  ;;  %v28_v2 = vld [vmem:[#allocation4 + $0x8] sm:$0xff] }
   0xd   :  { %26 = vst.msk [vmem:[#allocation3] sm:$0xff] %vm24_vm0, %v87_v0  ;;  %v37_v3 = vadd.f32 %v28_v2, %v27_v1  ;;  %v30_v4 = vmax.f32 %v27_v1, %v28_v2  ;;  %v88_v5 = vmov -inf   ;;  %s89_s0 = smov 1   ;;  %vm53_vm1 = vcmask 15368  }
   0xe   :  { %25 = vst.msk [vmem:[#allocation2] sm:$0xff] %vm24_vm0, %v88_v5 }
   0xf   :  { %38 = vadd.xlane.f32.xlu0 %v37_v3 }
  0x13   :  { %31 = vmax.xlane.f32.xlu0 %v30_v4 }
  0x14   :  { %v36_v6 = vld [vmem:[#allocation3] sm:$0xff] }
  0x15   :  { %v29_v9 = vld [vmem:[#allocation2] sm:$0xff] }
  0x98   :  { %v39_v7 = vpop.xlane.xlu0 %38 }
  0x99   :  { %v40_v8 = vadd.f32 %v39_v7, %v36_v6 }
  0x9b   :  { %41 = vst.msk [vmem:[#allocation3] sm:$0xff] %vm24_vm0, %v40_v8 }
  0x9c   :  { %v32_v10 = vpop.xlane.xlu0 %31 }
  0x9d   :  { %v33_v11 = vmax.f32 %v29_v9, %v32_v10 }
  0x9f   :  { %35 = vst.msk [vmem:[#allocation2] sm:$0xff] %vm24_vm0, %v33_v11 }
  0xa2   :  { %v47_v12 = vld [vmem:[#allocation3] sm:$0xff] }
  0xa3   :  { %v48_v13 = vmul.f32 0.00390625, %v47_v12 }
  0xa5   :  { %50 = vrot.lane.b32.xlu1 %v48_v13, %s89_s0 }
  0xa6   :  { %v45_v14 = vld [vmem:[#allocation2] sm:$0xff] }
  0xa7   :  { %46 = vst.msk [vmem:[%s115_s1] sm:$0xff] %vm24_vm0, %v45_v14 }
 0x117   :  { %v51_v15 = vpop.permute.xlu1 %50 }
 0x118   :  { %54 = vst.msk [vmem:[%s115_s1] sm:$0xff] %vm53_vm1, %v51_v15 }
 0x119   :  { %59 = vsyncpa [#allocation5], 1 }

</bundles_post_ra>
